<compile_context>
chip_gen: v6e
topology: v6e:2x2x1
jax: 0.10.0
libtpu: 0.0.40
codegen_flags: <defaults>
</compile_context>

<pallas_src>
import functools

import jax
import jax.numpy as jnp
from jax.experimental import pallas as pl
from jax.experimental.pallas import tpu as pltpu

LANES = 128
SUBLANES = 8
MAX_BLOCK_ROWS = 4096            # (4096, 128) f32 = 2 MiB per pipeline buffer

# Minimum sublane multiple for the second-minor block dim, per stream dtype.
_SUBLANE_MULTIPLE = {
    jnp.dtype(jnp.float32): 8,
    jnp.dtype(jnp.bfloat16): 16,
    jnp.dtype(jnp.float16): 16,
}


def _wbce_kernel(w_ref, o_ref, t_ref, out_ref, acc_ref, *,
                 n_elems, block_rows, steps_per_core, needs_mask, binary_targets):
    """Accumulate the weighted-BCE partial sum of one (block_rows, 128) tile."""
    c = pl.program_id(0)          # core-split axis ("parallel")
    i = pl.program_id(1)          # per-core step axis ("arbitrary")

    @pl.when(i == 0)
    def _():
        acc_ref[...] = jnp.zeros_like(acc_ref)

    w0 = w_ref[0]                 # weight for the negative-class term
    w1 = w_ref[1]                 # weight for the positive-class term

    def loss_of(o, t):
        if binary_targets:
            # One EUP log per element instead of two (exact for t in {0, 1}).
            pos = t > 0.5
            p = jnp.where(pos, o, 1.0 - o)
            w = jnp.where(pos, w1, w0)
            return w * jnp.log(p)
        wa = w1 * jnp.log(o)
        wb = w0 * jnp.log(1.0 - o)
        # w1*t*log(o) + w0*(1-t)*log(1-o)  ==  wb + t*(wa - wb)
        return wb + t * (wa - wb)

    def accumulate(loss):
        # Sublane-split reshape is layout-free; the axis-0 sum is a pure VALU
        # add tree, so the running accumulator stays one (8, 128) vreg tile
        # (no block-sized accumulator reload/store in the steady state).
        acc_ref[...] += loss.reshape(block_rows // SUBLANES, SUBLANES, LANES).sum(axis=0)

    if needs_mask:
        block_elems = block_rows * LANES
        base = (c * steps_per_core + i) * block_elems     # global element offset

        @pl.when(base + block_elems <= n_elems)
        def _():   # steady state: fully-valid block, zero mask overhead
            accumulate(loss_of(o_ref[...].astype(jnp.float32),
                               t_ref[...].astype(jnp.float32)))

        @pl.when(base + block_elems > n_elems)
        def _():   # ragged / padded / fully-out-of-range block
            rem = n_elems - base                          # may be <= 0
            row = jax.lax.broadcasted_iota(jnp.int32, (block_rows, LANES), 0)
            col = jax.lax.broadcasted_iota(jnp.int32, (block_rows, LANES), 1)
            valid = (row * LANES + col) < rem
            # Substitute a safe probability BEFORE the logs so invalid lanes
            # (padding / OOB overhang / stale data) never hit log(0)/log(<0).
            o = jnp.where(valid, o_ref[...].astype(jnp.float32), jnp.float32(0.5))
            t = t_ref[...].astype(jnp.float32)
            accumulate(jnp.where(valid, loss_of(o, t), jnp.float32(0.0)))
    else:
        accumulate(loss_of(o_ref[...].astype(jnp.float32),
                           t_ref[...].astype(jnp.float32)))

    @pl.when(i == pl.num_programs(1) - 1)
    def _():
        out_ref[0] = acc_ref[...]      # per-core lane-dense (8, 128) partials


def _as_native_float(x):
    if x.dtype in _SUBLANE_MULTIPLE:
        return x
    # TODO(synk): int8 / bool targets could stay narrow (sublane multiple 32)
    # to further cut HBM traffic; the wrapper upcast keeps the kernel simple.
    return x.astype(jnp.float32)


@functools.partial(jax.jit, static_argnames=("binary_targets",))
def weighted_bce(output, target, class_weights, *, binary_targets=False):
    """Weighted binary cross entropy; semantics identical to the PyTorch module.

    output, target: same shape (any), float-like. class_weights: shape (2,).
    Returns a scalar float32: -mean(w1*t*log(o) + w0*(1-t)*log(1-o)).
    binary_targets=True enables the one-log path (targets must be exactly 0/1);
    the default two-log path supports soft labels.
    """
    n_elems = output.size
    assert target.size == n_elems
    # Block-relative int32 index math in the kernel needs this bound.
    assert n_elems < 2**31 - 2**26, "weighted_bce: input too large for int32 indexing"

    o_flat = _as_native_float(output).reshape(-1)
    t_flat = _as_native_float(target).reshape(-1)

    sub = max(_SUBLANE_MULTIPLE[o_flat.dtype], _SUBLANE_MULTIPLE[t_flat.dtype])
    align = sub * LANES
    n_pad = (-n_elems) % align
    if n_pad:
        # TODO(synk): jnp.pad copies both streams end-to-end; if unaligned sizes
        # occur in production, handle the ragged tail in plain jnp (or DMA exact
        # chunks via memory_space=pl.ANY) instead of padding everything.
        o_flat = jnp.pad(o_flat, (0, n_pad), constant_values=0.5)
        t_flat = jnp.pad(t_flat, (0, n_pad), constant_values=0.0)

    rows = (n_elems + n_pad) // LANES                     # multiple of `sub`
    steps_per_core = pl.cdiv(rows, 2 * MAX_BLOCK_ROWS)
    block_rows = sub * pl.cdiv(rows, sub * 2 * steps_per_core)   # <= MAX_BLOCK_ROWS
    n_real_blocks = pl.cdiv(rows, block_rows)
    covered = 2 * steps_per_core * block_rows * LANES
    needs_mask = covered != n_elems                       # padding and/or partial block

    o2d = o_flat.reshape(rows, LANES)
    t2d = t_flat.reshape(rows, LANES)

    spc = steps_per_core
    if 2 * spc > n_real_blocks:
        # Keep every DMA in bounds: surplus (fully-masked) steps re-read the
        # last real block; their contribution is zeroed by the in-kernel mask.
        last = n_real_blocks - 1
        index_map = lambda c, i: (jnp.minimum(c * spc + i, last), 0)
    else:
        index_map = lambda c, i: (c * spc + i, 0)

    tile_spec = pl.BlockSpec((block_rows, LANES), index_map)

    kernel = functools.partial(
        _wbce_kernel, n_elems=n_elems, block_rows=block_rows,
        steps_per_core=steps_per_core, needs_mask=needs_mask,
        binary_targets=binary_targets)

    partials = pl.pallas_call(
        kernel,
        out_shape=jax.ShapeDtypeStruct((2, SUBLANES, LANES), jnp.float32),
        grid_spec=pltpu.PrefetchScalarGridSpec(
            num_scalar_prefetch=0,
            grid=(2, steps_per_core),
            in_specs=[
                pl.BlockSpec(memory_space=pltpu.MemorySpace.SMEM),  # class_weights
                tile_spec,   # output probabilities (native dtype)
                tile_spec,   # targets (native dtype)
            ],
            out_specs=pl.BlockSpec((1, SUBLANES, LANES), lambda c, i: (c, 0, 0)),
            scratch_shapes=[pltpu.VMEM((SUBLANES, LANES), jnp.float32)],
        ),
        compiler_params=pltpu.CompilerParams(
            dimension_semantics=("parallel", "arbitrary"),
        ),
    )(class_weights.astype(jnp.float32), o2d, t2d)

    # -mean(loss) = -(sum / N); the final 2x8x128 reduce is trivial XLA work.
    return -(jnp.sum(partials) / jnp.float32(n_elems))


def _reference(output, target, class_weights):
    o = output.astype(jnp.float32)
    t = target.astype(jnp.float32)
    loss = class_weights[1] * (t * jnp.log(o)) + class_weights[0] * (
        (1.0 - t) * jnp.log(1.0 - o)
    )
    return -jnp.mean(loss)


if __name__ == "__main__":
    key = jax.random.PRNGKey(0)
    class_weights = jnp.array([0.3, 0.7], dtype=jnp.float32)

    # (shape, stream dtype, binary_targets flag)
    cases = [
        ((2, 4, 16, 16), jnp.float32, False),    # small, aligned, one block per core
        ((2, 4, 8, 8), jnp.float32, False),      # tiny: 2nd core's block fully masked
        ((3, 5, 7, 11), jnp.float32, True),      # unaligned: padding + ragged mask (binary path)
        ((4, 4, 136, 128), jnp.float32, True),   # binary one-log fast path, no mask
        ((2, 4, 96, 128), jnp.bfloat16, False),  # native bf16 streams (no wrapper upcast)
        ((2, 4, 320, 512), jnp.float32, False),  # multi-step per core (grid (2, 2))
    ]

    for idx, (shape, dtype, binary) in enumerate(cases):
        k1, k2 = jax.random.split(jax.random.fold_in(key, idx))
        logits = jax.random.normal(k1, shape, jnp.float32)
        # Probabilities strictly inside (0, 1), even after a bf16 round-trip.
        output = jnp.clip(jax.nn.sigmoid(logits), 0.02, 0.98).astype(dtype)
        target = (jax.random.uniform(k2, shape) > 0.5).astype(dtype)

        got = weighted_bce(output, target, class_weights, binary_targets=binary)
        jax.block_until_ready(got)

        want = _reference(output, target, class_weights)
        assert jnp.allclose(got, want, rtol=1e-4, atol=1e-6), (shape, dtype, got, want)

    print("KERNEL_OK")
</pallas_src>

<mosaic_0001>
module attributes {stable_mosaic.version = 11 : i64} {
  func.func @_wbce_kernel(%arg0: i32, %arg1: i32, %arg2: memref<2xf32, #tpu.memory_space<smem>>, %arg3: memref<8x128xf32, #tpu.memory_space<vmem>>, %arg4: memref<8x128xf32, #tpu.memory_space<vmem>>, %arg5: memref<1x8x128xf32, #tpu.memory_space<vmem>>, %arg6: memref<8x128xf32, #tpu.memory_space<vmem>>) attributes {dimension_semantics = [#tpu.dimension_semantics<parallel>, #tpu.dimension_semantics<arbitrary>], iteration_bounds = array<i64: 2, 1>, scalar_prefetch = 0 : i64, scratch_operands = 1 : i64, tpu.core_type = #tpu.core_type<tc>, window_params = [{transform_indices = @transform_0, window_bounds = array<i64: 2>}, {transform_indices = @transform_1, window_bounds = array<i64: 8, 128>}, {transform_indices = @transform_2, window_bounds = array<i64: 8, 128>}, {transform_indices = @transform_3, window_bounds = array<i64: 1, 8, 128>}]} {
    %c0_i32 = arith.constant 0 : i32
    %0 = arith.cmpi eq, %arg1, %c0_i32 : i32
    %1 = arith.extui %0 : i1 to i32
    %c0_i32_0 = arith.constant 0 : i32
    %2 = arith.cmpi ne, %1, %c0_i32_0 : i32
    scf.if %2 {
      %cst_12 = arith.constant 0.000000e+00 : f32
      %26 = vector.broadcast %cst_12 : f32 to vector<8x128xf32>
      %c0_13 = arith.constant 0 : index
      %c0_14 = arith.constant 0 : index
      %27 = vector.load %arg6[%c0_13, %c0_14] : memref<8x128xf32, #tpu.memory_space<vmem>>, vector<8x128xf32>
      tpu.vector_store %arg6[%c0_13, %c0_14], %26 {strides = array<i32>} : memref<8x128xf32, #tpu.memory_space<vmem>>, vector<8x128xf32>,
    } else {
    }
    %c0 = arith.constant 0 : index
    %3 = memref.load %arg2[%c0] : memref<2xf32, #tpu.memory_space<smem>>
    %c1 = arith.constant 1 : index
    %4 = memref.load %arg2[%c1] : memref<2xf32, #tpu.memory_space<smem>>
    %c0_1 = arith.constant 0 : index
    %c0_2 = arith.constant 0 : index
    %5 = vector.load %arg3[%c0_1, %c0_2] : memref<8x128xf32, #tpu.memory_space<vmem>>, vector<8x128xf32>
    %c0_3 = arith.constant 0 : index
    %c0_4 = arith.constant 0 : index
    %6 = vector.load %arg4[%c0_3, %c0_4] : memref<8x128xf32, #tpu.memory_space<vmem>>, vector<8x128xf32>
    %7 = math.log %5 : vector<8x128xf32>
    %8 = vector.broadcast %4 : f32 to vector<8x128xf32>
    %9 = arith.mulf %8, %7 : vector<8x128xf32>
    %cst = arith.constant 1.000000e+00 : f32
    %10 = vector.broadcast %cst : f32 to vector<8x128xf32>
    %11 = arith.subf %10, %5 : vector<8x128xf32>
    %12 = math.log %11 : vector<8x128xf32>
    %13 = vector.broadcast %3 : f32 to vector<8x128xf32>
    %14 = arith.mulf %13, %12 : vector<8x128xf32>
    %15 = arith.subf %9, %14 : vector<8x128xf32>
    %16 = arith.mulf %6, %15 : vector<8x128xf32>
    %17 = arith.addf %14, %16 : vector<8x128xf32>
    %c0_5 = arith.constant 0 : index
    %c0_6 = arith.constant 0 : index
    %18 = vector.load %arg6[%c0_5, %c0_6] : memref<8x128xf32, #tpu.memory_space<vmem>>, vector<8x128xf32>
    %19 = vector.shape_cast %17 : vector<8x128xf32> to vector<1x8x128xf32>
    %cst_7 = arith.constant dense<0.000000e+00> : vector<8x128xf32>
    %20 = vector.multi_reduction <add>, %19, %cst_7 [0] : vector<1x8x128xf32> to vector<8x128xf32>
    %21 = arith.addf %18, %20 : vector<8x128xf32>
    %c0_8 = arith.constant 0 : index
    %c0_9 = arith.constant 0 : index
    %22 = vector.load %arg6[%c0_8, %c0_9] : memref<8x128xf32, #tpu.memory_space<vmem>>, vector<8x128xf32>
    tpu.vector_store %arg6[%c0_8, %c0_9], %21 {strides = array<i32>} : memref<8x128xf32, #tpu.memory_space<vmem>>, vector<8x128xf32>,
    %c0_i32_10 = arith.constant 0 : i32
    %23 = arith.cmpi eq, %arg1, %c0_i32_10 : i32
    %24 = arith.extui %23 : i1 to i32
    %c0_i32_11 = arith.constant 0 : i32
    %25 = arith.cmpi ne, %24, %c0_i32_11 : i32
    scf.if %25 {
      %c0_12 = arith.constant 0 : index
      %c0_13 = arith.constant 0 : index
      %26 = vector.load %arg6[%c0_12, %c0_13] : memref<8x128xf32, #tpu.memory_space<vmem>>, vector<8x128xf32>
      %c0_14 = arith.constant 0 : index
      %c0_15 = arith.constant 0 : index
      %c0_16 = arith.constant 0 : index
      %27 = vector.load %arg5[%c0_14, %c0_15, %c0_16] : memref<1x8x128xf32, #tpu.memory_space<vmem>>, vector<1x8x128xf32>
      %28 = vector.shape_cast %27 : vector<1x8x128xf32> to vector<8x128xf32>
      %29 = vector.shape_cast %26 : vector<8x128xf32> to vector<1x8x128xf32>
      tpu.vector_store %arg5[%c0_14, %c0_15, %c0_16], %29 {strides = array<i32>} : memref<1x8x128xf32, #tpu.memory_space<vmem>>, vector<1x8x128xf32>,
    } else {
    }
    return
  }
  func.func @transform_0(%arg0: i32, %arg1: i32) -> i32 {
    %c0_i32 = arith.constant 0 : i32
    %c0_i32_0 = arith.constant 0 : i32
    return %c0_i32 : i32
  }
  func.func @transform_1(%arg0: i32, %arg1: i32) -> (i32, i32) {
    %c1_i32 = arith.constant 1 : i32
    %0 = arith.muli %arg0, %c1_i32 : i32
    %1 = arith.addi %0, %arg1 : i32
    %c0_i32 = arith.constant 0 : i32
    %c0_i32_0 = arith.constant 0 : i32
    return %1, %c0_i32 : i32, i32
  }
  func.func @transform_2(%arg0: i32, %arg1: i32) -> (i32, i32) {
    %c1_i32 = arith.constant 1 : i32
    %0 = arith.muli %arg0, %c1_i32 : i32
    %1 = arith.addi %0, %arg1 : i32
    %c0_i32 = arith.constant 0 : i32
    %c0_i32_0 = arith.constant 0 : i32
    return %1, %c0_i32 : i32, i32
  }
  func.func @transform_3(%arg0: i32, %arg1: i32) -> (i32, i32, i32) {
    %c0_i32 = arith.constant 0 : i32
    %c0_i32_0 = arith.constant 0 : i32
    %c0_i32_1 = arith.constant 0 : i32
    return %arg0, %c0_i32, %c0_i32_0 : i32, i32, i32
  }
}

</mosaic_0001>

<bundles_post_ra>
// kernel: weighted_bce.1
= control target key start
LH: loop header
LB: loop body
LE: loop exit
PB: predicated region body
PF: predicated region fallthrough
CT: control target
= control target key end

     0   :  { %8 = vsyncpa [#allocation4], 0  ;;  %s455_s12 = smov 0   ;;  %s457_s13 = smov 0   ;;  %s517_s0 = inlined_call_operand.vmem [shape: f32[2], index: 0, kind: input, shape index: {}]   ;;  %s518_s1 = inlined_call_operand.vmem [shape: f32[16,128], index: 1, kind: input, shape index: {}]   ;;  %s519_s2 = inlined_call_operand.vmem [shape: f32[16,128], index: 2, kind: input, shape index: {}]   ;;  %s520_s3 = inlined_call_operand.vmem [shape: f32[2,8,128], index: 3, kind: output, shape index: {}]  }
   0x1   :  { %s459_s14 = smov 0  }
   0x2 LB: > { %s339_s15 = sadd.s32 4294967295, %s432_s14   ;;  %s26_s16 = sadd.s32 1, %s428_s13  ;;  %s432_s14 = sphi %s459_s14, %s14_s14   ;;  %s428_s13 = sphi %s457_s13, %s524_s13   ;;  %s424_s12 = sphi %s455_s12, %s523_s12  }
   0x3   : > { %p28_p0 = scmp.ge.s32.totalorder %s26_s16, 2  ;;  %p341_p1 = scmp.ge.s32.totalorder %s432_s14, 1 }
   0x4   : > { %p134_p2 = scmp.lt.s32.totalorder %s432_s14, 3  ;;  %p480_p4 = scmp.eq.s32.totalorder %s339_s15, 0 }
   0x5   : > { %s526_s16 = smov (%p28_p0, %s26_s16), 0  ;;  %s147_s21 = sshll.u32 %s517_s0, 4  ;;  %s148_s21 = int_to_ptr.vmem [resolvable:$true] %s147_s21 }
   0x6   : > { %p476_p3 = pnand %p341_p1, %p134_p2  ;;  %s391_s22 = scalar_lea.vmem %s148_s21, 16 }
   0x7   : > { %p392_p7 = scmp.ne.s32.totalorder %s148_s21, %s391_s22  ;;  %p399_p11 = scmp.lt.s32.totalorder %s148_s21, %s148_s21 }
   0x8   : > { %p356_p5 = pneg %p476_p3  ;;  %p400_p12 = scmp.lt.s32.totalorder %s391_s22, %s391_s22 }
   0xa   : > { %p357_p6 = pnand %p480_p4, %p356_p5  ;;  %p401_p13 = por %p400_p12, %p399_p11 }
   0xc   : > { %p393_p8 = pneg %p357_p6 }
   0xe   : > { %p394_p9 = pnand %p393_p8, %p392_p7 }
  0x10   : > { %p395_p10 = pneg %p394_p9 }
  0x12   : > { %p402_p0 = pnand %p401_p13, %p395_p10 }
  0x14   : > { %405 = shalt.err (!%p402_p0)
}
  0x15   : > { %s434_s23 = smov [#allocation3]   ;;  %178 = sbr.rel (%p476_p3) target bundleno = 62 (0x3e), region = 32 }
  0x16   : > { %359 = dma.vmem_to_smem (!%p357_p6), %s148_s21, 16, %s434_s23, [#allocation4]  }
  0x1a   : > { %419 = dma.done.wait (%p480_p4), [#allocation4], 16  }
  0x1b   : > { %421 = vsyncadd (%p480_p4), [#allocation4], 4294967280 }
  0x1c   : > { %184 = sfence }
  0x1d   : > { %p208_p1 = scmp.lt.s32.totalorder %s424_s12, 1  ;;  %s349_s28 = sld [smem:[#allocation3 + $0x1]] }
  0x1e   : > { %s228_s29 = sld [smem:[#allocation3]] }
  0x1f   : > { %s528_s12 = smov (!%p208_p1, %s424_s12), 1 }
  0x20   : > { %s346_s24 = sshll.u32 %s528_s12, 3 }
  0x21   : > { %s211_s27 = scalar_lea.vmem %s518_s1, %s346_s24  ;;  %s217_s5 = scalar_lea.vmem %s519_s2, %s346_s24 }
  0x22   : > { %v230_v0 = vld [vmem:[%s211_s27] sm:$0xff]  ;;  %s222_s8 = scalar_lea.vmem %s520_s3, %s346_s24 }
  0x23   : > { %387 = vlog2.f32 %v230_v0  ;;  %v236_v1 = vsub.f32 1.0, %v230_v0  ;;  %v234_v3 = vstv %s349_s28  ;;  %v231_v10 = vld [vmem:[%s217_s5] sm:$0xff] }
  0x24   : > { %v239_v6 = vstv %s228_s29 }
  0x25   : > { %389 = vlog2.f32 %v236_v1 }
  0x30   : > { %v388_v2 = vpop.eup %387 }
  0x31   : > { %v233_v4 = vmul.f32 0.6931472, %v388_v2 }
  0x32   : > { %v390_v5 = vpop.eup %389 }
  0x33   : > { %v235_v7 = vmul.f32 %v234_v3, %v233_v4  ;;  %v238_v8 = vmul.f32 0.6931472, %v390_v5 }
  0x35   : > { %v240_v9 = vmul.f32 %v239_v6, %v238_v8 }
  0x37   : > { %v241_v11 = vsub.f32 %v235_v7, %v240_v9 }
  0x39   : > { %v242_v12 = vmul.f32 %v241_v11, %v231_v10 }
  0x3b   : > { %v243_v13 = vadd.f32 %v242_v12, %v240_v9 }
  0x3d   : > { %252 = vst [vmem:[%s222_s8] sm:$0xff] %v243_v13 }
  0x3e PF: > { %s14_s14 = sadd.s32 1, %s432_s14   ;;  %s523_s12 = smov %s428_s13 }
  0x3f   : > { %p11_p2 = scmp.ge.s32.totalorder %s14_s14, 4   ;;  %s524_s13 = smov %s526_s16 }
  0x41   :  { %13 = sbr.rel (!%p11_p2) target bundleno = 2 (0x2), region = 78 }
  0x46   :  { %272 = vsyncpa [#allocation4], 1 }
  0x47   :  { %274 = vsyncpa [#allocation4 + $0x1], 1 }

</bundles_post_ra>
